<compile_context>
chip_gen: v5e
topology: v5e:2x2
jax: 0.10.0
libtpu: 0.0.40
codegen_flags: <defaults>
</compile_context>

<pallas_src>
import jax
import jax.numpy as jnp
from jax.experimental import pallas as pl
from jax.experimental.pallas import tpu as pltpu


def fused_model_kernel(x1_ref, w_ref, b_ref, x2_ref, o_ref, v3_ref):
    M, K = x1_ref.shape
    H = w_ref.shape[1]
    N = x2_ref.shape[1]
    R, C = o_ref.shape          # R = (M * N) // 16, C = 16
    G = C // N                  # source rows folded into one output row (== 2)

    # v1 = x1 @ W^T + b   (MXU, f32 accumulate; implicit (1, H) bias broadcast)
    v1 = jnp.dot(x1_ref[...], w_ref[...], preferred_element_type=jnp.float32)
    v1 = v1 + b_ref[...]

    # v2 = relu(v1)
    v2 = jnp.maximum(v1, 0.0)

    # v3 = v2 @ x2   (MXU, f32 operands and accumulate) -> staged in VMEM scratch
    v3_ref[...] = jnp.dot(v2, x2_ref[...], preferred_element_type=jnp.float32)

    # v5 = cat([v3], dim=0).view(-1, 16):
    #   out[r, g*N + k] = v3[G*r + g, k]
    # Pure data movement: sublane-strided loads from the scratch feed
    # lane-sliced stores into the output (no extra MXU work).
    for g in range(G):          # unrolled at trace time (G == 2)
        o_ref[:, g * N:(g + 1) * N] = v3_ref[pl.ds(g, R, stride=G), :]


def model_forward(x1, w_t, b, x2):
    M, K = x1.shape
    Kw, H = w_t.shape
    Hx, N = x2.shape
    assert K == Kw and H == Hx

    out_cols = 16                      # v5 = v4.view(-1, 16)
    assert (M * N) % out_cols == 0 and out_cols % N == 0
    R = (M * N) // out_cols

    flops = 2 * M * K * H + 2 * M * H * N
    bytes_accessed = 4 * (M * K + K * H + H + H * N + R * out_cols)

    vmem = pltpu.MemorySpace.VMEM
    return pl.pallas_call(
        fused_model_kernel,
        out_shape=jax.ShapeDtypeStruct((R, out_cols), jnp.float32),
        in_specs=[
            pl.BlockSpec((M, K), lambda: (0, 0), memory_space=vmem),
            pl.BlockSpec((K, H), lambda: (0, 0), memory_space=vmem),
            pl.BlockSpec((1, H), lambda: (0, 0), memory_space=vmem),
            pl.BlockSpec((H, N), lambda: (0, 0), memory_space=vmem),
        ],
        out_specs=pl.BlockSpec((R, out_cols), lambda: (0, 0), memory_space=vmem),
        scratch_shapes=[pltpu.VMEM((M, N), jnp.float32)],
        cost_estimate=pl.CostEstimate(
            flops=flops, transcendentals=0, bytes_accessed=bytes_accessed),
    )(x1, w_t, b, x2)


if __name__ == "__main__":
    key = jax.random.PRNGKey(0)
    k_x1, k_x2, k_w, k_b = jax.random.split(key, 4)

    M, K_in, H, N = 16, 32, 16, 8

    # Inputs (analogous to torch.randn)
    x1 = jax.random.normal(k_x1, (M, K_in), dtype=jnp.float32)
    x2 = jax.random.normal(k_x2, (H, N), dtype=jnp.float32)

    # Deterministic Linear(32, 16) params, PyTorch-style uniform init.
    bound = 1.0 / (K_in ** 0.5)
    w_t = jax.random.uniform(k_w, (K_in, H), minval=-bound, maxval=bound,
                             dtype=jnp.float32)   # = weight.T
    b = jax.random.uniform(k_b, (1, H), minval=-bound, maxval=bound,
                           dtype=jnp.float32)

    out = jax.block_until_ready(model_forward(x1, w_t, b, x2))

    # Sanity check against a plain-JAX reference of the module's forward.
    ref = (jnp.maximum(x1 @ w_t + b, 0.0) @ x2).reshape(-1, 16)
    assert out.shape == ref.shape
    assert jnp.allclose(out, ref, atol=1e-5, rtol=1e-5)

    print("KERNEL_OK")
</pallas_src>

<mosaic_0001>
module attributes {stable_mosaic.version = 11 : i64} {
  func.func @fused_model_kernel(%arg0: memref<16x32xf32, #tpu.memory_space<vmem>>, %arg1: memref<32x16xf32, #tpu.memory_space<vmem>>, %arg2: memref<1x16xf32, #tpu.memory_space<vmem>>, %arg3: memref<16x8xf32, #tpu.memory_space<vmem>>, %arg4: memref<8x16xf32, #tpu.memory_space<vmem>>, %arg5: memref<16x8xf32, #tpu.memory_space<vmem>>) attributes {dimension_semantics = [], scalar_prefetch = 0 : i64, scratch_operands = 1 : i64, tpu.core_type = #tpu.core_type<tc>} {
    %c0 = arith.constant 0 : index
    %c0_0 = arith.constant 0 : index
    %0 = vector.load %arg0[%c0, %c0_0] : memref<16x32xf32, #tpu.memory_space<vmem>>, vector<16x32xf32>
    %c0_1 = arith.constant 0 : index
    %c0_2 = arith.constant 0 : index
    %1 = vector.load %arg1[%c0_1, %c0_2] : memref<32x16xf32, #tpu.memory_space<vmem>>, vector<32x16xf32>
    %cst = arith.constant dense<0.000000e+00> : vector<16x16xf32>
    %2 = tpu.matmul %0, %1, %cst {dimension_numbers = #tpu.dot_dimension_numbers<[1], [0], [0], [1], [0, 0, 1, 1], [], []>} : vector<16x32xf32>, vector<32x16xf32>, vector<16x16xf32> -> vector<16x16xf32>
    %c0_3 = arith.constant 0 : index
    %c0_4 = arith.constant 0 : index
    %3 = vector.load %arg2[%c0_3, %c0_4] : memref<1x16xf32, #tpu.memory_space<vmem>>, vector<1x16xf32>
    %4 = vector.broadcast %3 : vector<1x16xf32> to vector<16x16xf32>
    %5 = arith.addf %2, %4 : vector<16x16xf32>
    %cst_5 = arith.constant 0.000000e+00 : f32
    %6 = vector.broadcast %cst_5 : f32 to vector<16x16xf32>
    %7 = arith.maximumf %5, %6 : vector<16x16xf32>
    %c0_6 = arith.constant 0 : index
    %c0_7 = arith.constant 0 : index
    %8 = vector.load %arg3[%c0_6, %c0_7] : memref<16x8xf32, #tpu.memory_space<vmem>>, vector<16x8xf32>
    %cst_8 = arith.constant dense<0.000000e+00> : vector<16x8xf32>
    %9 = tpu.matmul %7, %8, %cst_8 {dimension_numbers = #tpu.dot_dimension_numbers<[1], [0], [0], [1], [0, 0, 1, 1], [], []>} : vector<16x16xf32>, vector<16x8xf32>, vector<16x8xf32> -> vector<16x8xf32>
    %c0_9 = arith.constant 0 : index
    %c0_10 = arith.constant 0 : index
    %10 = vector.load %arg5[%c0_9, %c0_10] : memref<16x8xf32, #tpu.memory_space<vmem>>, vector<16x8xf32>
    tpu.vector_store %arg5[%c0_9, %c0_10], %9 {strides = array<i32>} : memref<16x8xf32, #tpu.memory_space<vmem>>, vector<16x8xf32>,
    %c0_11 = arith.constant 0 : index
    %c0_12 = arith.constant 0 : index
    %11 = tpu.strided_load %arg5[%c0_11, %c0_12] {strides = array<i32: 2, 1>} : memref<16x8xf32, #tpu.memory_space<vmem>>, vector<8x8xf32>
    %c0_13 = arith.constant 0 : index
    %c0_14 = arith.constant 0 : index
    %12 = vector.load %arg4[%c0_13, %c0_14] : memref<8x16xf32, #tpu.memory_space<vmem>>, vector<8x8xf32>
    tpu.vector_store %arg4[%c0_13, %c0_14], %11 {strides = array<i32>} : memref<8x16xf32, #tpu.memory_space<vmem>>, vector<8x8xf32>,
    %c1 = arith.constant 1 : index
    %c0_15 = arith.constant 0 : index
    %13 = tpu.strided_load %arg5[%c1, %c0_15] {strides = array<i32: 2, 1>} : memref<16x8xf32, #tpu.memory_space<vmem>>, vector<8x8xf32>
    %c0_16 = arith.constant 0 : index
    %c8 = arith.constant 8 : index
    %14 = vector.load %arg4[%c0_16, %c8] : memref<8x16xf32, #tpu.memory_space<vmem>>, vector<8x8xf32>
    tpu.vector_store %arg4[%c0_16, %c8], %13 {strides = array<i32>} : memref<8x16xf32, #tpu.memory_space<vmem>>, vector<8x8xf32>,
    return
  }
}

</mosaic_0001>

<bundles_post_ra>
// kernel: tpu_custom_call.1
= control target key start
LH: loop header
LB: loop body
LE: loop exit
PB: predicated region body
PF: predicated region fallthrough
CT: control target
= control target key end

     0   :  { %s217_s0 = inlined_call_operand.vmem [shape: f32[16,32], index: 0, kind: input, shape index: {}]   ;;  %s218_s1 = inlined_call_operand.vmem [shape: f32[32,16], index: 1, kind: input, shape index: {}]   ;;  %s219_s2 = inlined_call_operand.vmem [shape: f32[1,16], index: 2, kind: input, shape index: {}]   ;;  %s220_s3 = inlined_call_operand.vmem [shape: f32[16,8], index: 3, kind: input, shape index: {}]   ;;  %s221_s4 = inlined_call_operand.hbm [shape: f32[8,16], index: 4, kind: output, shape index: {}]  }
   0x1   :  { %v23_v0 = vld [vmem:[%s218_s1 + $0x18] sm:$0xff]  ;;  %v22_v1 = vld [vmem:[%s218_s1 + $0x10] sm:$0xff]  ;;  %v21_v2 = vld [vmem:[%s218_s1 + $0x8] sm:$0xff] }
   0x2   :  { %125 = vmatpush.msra.mxu2 %v23_v0  ;;  %47 = vmatpush.msra.mxu0 %v23_v0 }
   0x3   :  { %9 = vsyncpa [#allocation4], 0  ;;  %v20_v3 = vld [vmem:[%s218_s1] sm:$0xff]  ;;  %v19_v4 = vld [vmem:[%s217_s0 + $0x8] sm:$0xff]  ;;  %vm28_vm0 = vcmask 261120   ;;  %vm62_vm1 = vcmask 130048  }
   0x4   :  { %126 = vmatpush.msra.mxu2 %v22_v1  ;;  %48 = vmatpush.msra.mxu0 %v22_v1  ;;  %v18_v5 = vld [vmem:[%s217_s0] sm:$0xff]  ;;  %v61_v6 = vld [vmem:[%s220_s3 + $0x8] sm:$0xff]  ;;  %vm92_vm2 = vcmask 64512   ;;  %s160_s0 = smov 8   ;;  %s112_s8 = sshll.u32 %s221_s4, 4  ;;  %vm103_vm3 = vcmask 130112   ;;  %s113_s8 = int_to_ptr.hbm [resolvable:$true] %s112_s8 }
   0x5   :  { %129 = vmatpush.msra.mxu3 %v61_v6  ;;  %83 = vmatpush.msra.mxu1 %v61_v6  ;;  %v60_v7 = vld [vmem:[%s220_s3] sm:$0xff] }
   0x6   :  { %127 = vmatpush.msra.mxu2 %v21_v2  ;;  %49 = vmatpush.msra.mxu0 %v21_v2  ;;  %v133_v8 = vld [vmem:[%s219_s2] ss:$0 sm:$0xff]  ;;  %s161_s2 = smov [#allocation3]  }
   0x7   :  { %130 = vmatpush.msra.mxu3 %v60_v7  ;;  %84 = vmatpush.msra.mxu1 %v60_v7  ;;  %s110_s3 = sshll.u32 %s161_s2, 4  ;;  %s111_s3 = int_to_ptr.vmem [resolvable:$true] %s110_s3 }
   0x8   :  { %128 = vmatpush.msra.mxu2 %v20_v3  ;;  %50 = vmatpush.msra.mxu0 %v20_v3 }
   0x9   :  { %122 = vmatmul.msk.f32.vlgmr.msra.gmra.mxu2 %vm28_vm0, %v19_v4  ;;  %121 = vmatmul.msk.f32.vlgmr.msra.gmra.mxu0 %vm28_vm0, %v18_v5 }
  0x86   :  { %v52_v9 = vpop.f32.mrf.mxu0 }
  0x87   :  { %v53_v10 = vadd.f32 %v133_v8, %v52_v9 }
  0x89   :  { %v58_v11 = vmax.f32 %v53_v10, 0.0 }
  0x8b   :  { %123 = vmatmul.msk.f32.vlgmr.msra.gmra.mxu1 %vm62_vm1, %v58_v11 }
  0x8c   :  { %v55_v12 = vpop.f32.mrf.mxu2 }
  0x8d   :  { %v56_v13 = vadd.f32 %v133_v8, %v55_v12 }
  0x8f   :  { %v59_v14 = vmax.f32 %v56_v13, 0.0 }
  0x91   :  { %124 = vmatmul.msk.f32.vlgmr.msra.gmra.mxu3 %vm62_vm1, %v59_v14 }
 0x108   :  { %v86_v15 = vpop.f32.mrf.mxu1 }
 0x109   :  { %93 = vst.msk [vmem:[#allocation2] sm:$0xff] %vm92_vm2, %v86_v15 }
 0x114   :  { %v89_v16 = vpop.f32.mrf.mxu3 }
 0x115   :  { %94 = vst.msk [vmem:[#allocation2 + $0x8] sm:$0xff] %vm92_vm2, %v89_v16 }
 0x11c   :  { %v98_v17 = vld [vmem:[#allocation2 + $0x1] ss:$2 sm:$0xff]  ;;  %v95_v18 = vld [vmem:[#allocation2] ss:$2 sm:$0xff] }
 0x11d   :  { %100 = vrot.lane.b32.xlu0 %v98_v17, %s160_s0  ;;  %96 = vst.msk [vmem:[#allocation3] sm:$0xff] %vm92_vm2, %v95_v18 }
 0x18f   :  { %v101_v19 = vpop.permute.xlu0 %100 }
 0x190   :  { %104 = vst.msk [vmem:[#allocation3] sm:$0xff] %vm103_vm3, %v101_v19 }
 0x191   :  { %115 = dma.vmem_to_hbm [thread:$0]  %s111_s3, 128, %s113_s8, [#allocation4]  }
 0x192   :  { %158 = dma.done.wait [#allocation4], 128  }
 0x193   :  { %159 = vsyncadd [#allocation4], 4294967168 }
 0x194   :  { %120 = vsyncpa [#allocation4], 1 }

</bundles_post_ra>
